<compile_context>
chip_gen: v5e
topology: v5e:2x2
jax: 0.10.0
libtpu: 0.0.40
codegen_flags: <defaults>
</compile_context>

<pallas_src>
import jax
import jax.numpy as jnp
from jax.experimental import pallas as pl
from jax.experimental.pallas import tpu as pltpu


# ---------------------------------------------------------------------------
# Kernel
# ---------------------------------------------------------------------------
def fused_three_conv_kernel(x_ref, w_ref, b_ref, o_ref, xpad_ref):
    """One grid step = Nb batch images; all three conv+bias+ReLU layers fused.

    x_ref    : (Nb, H, W*C)      f32  lane-dense input slab
    w_ref    : (3, 3*W*C, W*C)   bf16 per-layer block-Toeplitz weights, 3 kh
                                 taps folded into the contraction dimension
    b_ref    : (3, 1, W*C)       f32  per-layer (bias - sub), tiled over W
    o_ref    : (Nb, H, W*C)      f32  lane-dense output slab
    xpad_ref : (Nb*(H+2), W*C)   f32  row-halo scratch, one padded block/image
    """
    Nb, H, WC = x_ref.shape
    Hp = H + 2
    P = Nb * Hp
    M = P - 2                      # rows fed to the MXU per layer
    n_layers = w_ref.shape[0]

    # Zero ONLY the 2*Nb halo rows (interior rows are overwritten every layer;
    # the intermediate writes below never touch halo rows, so they stay zero).
    zrow = jnp.zeros((1, WC), jnp.float32)
    for i in range(Nb):
        base = i * Hp
        xpad_ref[base:base + 1, :] = zrow                   # top halo
        xpad_ref[base + H + 1:base + H + 2, :] = zrow       # bottom halo
        xpad_ref[base + 1:base + 1 + H, :] = x_ref[i].astype(jnp.float32)

    for layer in range(n_layers):
        # bf16 operands, f32 accumulation: native MXU path on v5e/v6e/v7x.
        xp = xpad_ref[...].astype(jnp.bfloat16)             # (P, WC)
        # Fold kh into the contraction: LHS (M, 3*WC) x (3*WC, WC) = one dot.
        lhs = jnp.concatenate([xp[0:M], xp[1:M + 1], xp[2:M + 2]], axis=-1)
        y = jnp.dot(lhs, w_ref[layer], preferred_element_type=jnp.float32)
        # bias and the "- const" were folded into b_ref by the wrapper.
        act = jnp.maximum(y + b_ref[layer], 0.0)             # (M, WC) f32

        last = layer == n_layers - 1
        for i in range(Nb):
            blk = act[i * Hp:i * Hp + H]                      # image i rows
            if last:
                o_ref[i] = blk.astype(o_ref.dtype)
            else:
                xpad_ref[i * Hp + 1:i * Hp + 1 + H, :] = blk  # next layer in


# ---------------------------------------------------------------------------
# One-time constant preparation (NOT per forward call)
# ---------------------------------------------------------------------------
def prepare_fused_params(params, W):
    """Conv params -> folded block-Toeplitz bf16 weights + lane-tiled f32 bias.

    For each layer, T[kh][wi*C+ci, wo*C+co] = w[kh, wi-wo+1, ci, co] (0 else):
    this encodes the kw shift AND the SAME zero padding along W. The 3 kh
    matrices are stacked along the contraction dim -> (3*W*C, W*C).
    The per-layer "- sub" constant is folded into the bias.
    """
    subs = (0.0, 5.0, 4.0)         # relu(relu(z) - s) == relu(z - s) for s >= 0
    ws = jnp.stack([w for (w, _) in params])       # (L, 3, 3, C, C)
    L, K, _, C, _ = ws.shape
    WC = W * C
    # S[kw, wi, wo] = 1 iff wi == wo + kw - 1   (stride 1, SAME padding)
    S = jnp.stack([jnp.eye(W, W, 1 - kw, dtype=ws.dtype) for kw in range(K)])
    # T[l, kh, wi, ci, wo, co] = sum_kw S[kw, wi, wo] * w[l, kh, kw, ci, co]
    T = jnp.einsum("kab,lhkcd->lhacbd", S, ws)     # (L, 3, W, C, W, C)
    w_stk = T.reshape(L, K * WC, WC).astype(jnp.bfloat16)
    b_stk = jnp.stack([(jnp.tile(b, W) - s).reshape(1, WC)
                       for (_, b), s in zip(params, subs)]).astype(jnp.float32)
    return w_stk, b_stk


# ---------------------------------------------------------------------------
# Jitted forward (NCHW interface, matching the PyTorch module)
# ---------------------------------------------------------------------------
@jax.jit
def model_forward(x_nchw, w_stk, b_stk):
    N, C, H, W = x_nchw.shape
    WC = W * C

    # NCHW -> lane-dense (N, H, W*C); fused by XLA inside this jit.
    x = jnp.transpose(x_nchw, (0, 2, 3, 1)).reshape(N, H, WC)

    # Images per grid step: largest divisor of N that is <= 8.
    Nb = max(d for d in range(1, min(N, 8) + 1) if N % d == 0)
    P = Nb * (H + 2)

    out = pl.pallas_call(
        fused_three_conv_kernel,
        out_shape=jax.ShapeDtypeStruct((N, H, WC), x.dtype),
        grid_spec=pltpu.PrefetchScalarGridSpec(
            num_scalar_prefetch=0,
            grid=(N // Nb,),
            in_specs=[
                pl.BlockSpec((Nb, H, WC), lambda n: (n, 0, 0)),
                pl.BlockSpec(w_stk.shape, lambda n: (0, 0, 0)),
                pl.BlockSpec(b_stk.shape, lambda n: (0, 0, 0)),
            ],
            out_specs=pl.BlockSpec((Nb, H, WC), lambda n: (n, 0, 0)),
            scratch_shapes=[pltpu.VMEM((P, WC), jnp.float32)],
        ),
        compiler_params=pltpu.CompilerParams(
            dimension_semantics=("parallel",)),
    )(x, w_stk, b_stk)

    # lane-dense -> NCHW
    return jnp.transpose(out.reshape(N, H, W, C), (0, 3, 1, 2))


# ---------------------------------------------------------------------------
# Pure-JAX reference (matmul_dtype=bf16 matches the kernel's MXU precision)
# ---------------------------------------------------------------------------
def _ref_forward(x_nchw, params, matmul_dtype=jnp.float32):
    x = jnp.transpose(x_nchw, (0, 2, 3, 1))                  # NHWC, f32
    subs = (0.0, 5.0, 4.0)
    for (w, b), s in zip(params, subs):
        y = jax.lax.conv_general_dilated(
            x.astype(matmul_dtype), w.astype(matmul_dtype),
            window_strides=(1, 1), padding="SAME",
            dimension_numbers=("NHWC", "HWIO", "NHWC"),
            preferred_element_type=jnp.float32)
        x = jax.nn.relu(jax.nn.relu(y + b) - s)
    return jnp.transpose(x, (0, 3, 1, 2))


if __name__ == "__main__":
    # Small, module-consistent shapes; C=8, W=16 gives lane-dense W*C == 128.
    N, C, H, W = 2, 8, 16, 16

    key = jax.random.PRNGKey(0)
    kx, k1, k2, k3, kb1, kb2, kb3 = jax.random.split(key, 7)

    x = jax.random.normal(kx, (N, C, H, W), dtype=jnp.float32)

    def init_conv(kw_, kb_):
        w = jax.random.normal(kw_, (3, 3, C, C), dtype=jnp.float32) * 0.2
        b = jax.random.normal(kb_, (C,), dtype=jnp.float32) * 0.1
        return w, b

    params = (init_conv(k1, kb1), init_conv(k2, kb2), init_conv(k3, kb3))

    # One-time constant preparation (inference-time constants).
    w_stk, b_stk = prepare_fused_params(params, W)
    jax.block_until_ready(w_stk)

    out = model_forward(x, w_stk, b_stk)
    out = jax.block_until_ready(out)
    assert out.shape == (N, C, H, W)

    # Primary check: reference with the same bf16-operand / f32-accum precision.
    ref_bf16 = _ref_forward(x, params, matmul_dtype=jnp.bfloat16)
    assert jnp.max(jnp.abs(out - ref_bf16)) < 3e-3, "mismatch vs bf16 reference"
    # Sanity check vs the full-f32 model (loose: three chained bf16 convs).
    ref_f32 = _ref_forward(x, params, matmul_dtype=jnp.float32)
    assert jnp.max(jnp.abs(out - ref_f32)) < 3e-1, "mismatch vs f32 reference"

    print("KERNEL_OK")
</pallas_src>

<mosaic_0001>
module attributes {stable_mosaic.version = 11 : i64} {
  func.func @fused_three_conv_kernel(%arg0: i32, %arg1: memref<2x16x128xf32, #tpu.memory_space<vmem>>, %arg2: memref<3x384x128xbf16, #tpu.memory_space<vmem>>, %arg3: memref<3x1x128xf32, #tpu.memory_space<vmem>>, %arg4: memref<2x16x128xf32, #tpu.memory_space<vmem>>, %arg5: memref<36x128xf32, #tpu.memory_space<vmem>>) attributes {dimension_semantics = [#tpu.dimension_semantics<parallel>], iteration_bounds = array<i64: 1>, scalar_prefetch = 0 : i64, scratch_operands = 1 : i64, tpu.core_type = #tpu.core_type<tc>, window_params = [{transform_indices = @transform_0, window_bounds = array<i64: 2, 16, 128>}, {pipeline_mode = #tpu.pipeline_mode<synchronous>, transform_indices = @transform_1, window_bounds = array<i64: 3, 384, 128>}, {pipeline_mode = #tpu.pipeline_mode<synchronous>, transform_indices = @transform_2, window_bounds = array<i64: 3, 1, 128>}, {transform_indices = @transform_3, window_bounds = array<i64: 2, 16, 128>}]} {
    %cst = arith.constant 0.000000e+00 : f32
    %0 = vector.broadcast %cst : f32 to vector<1x128xf32>
    %c0 = arith.constant 0 : index
    %c0_0 = arith.constant 0 : index
    %1 = vector.load %arg5[%c0, %c0_0] : memref<36x128xf32, #tpu.memory_space<vmem>>, vector<1x128xf32>
    tpu.vector_store %arg5[%c0, %c0_0], %0 {strides = array<i32>} : memref<36x128xf32, #tpu.memory_space<vmem>>, vector<1x128xf32>,
    %c17 = arith.constant 17 : index
    %c0_1 = arith.constant 0 : index
    %2 = vector.load %arg5[%c17, %c0_1] : memref<36x128xf32, #tpu.memory_space<vmem>>, vector<1x128xf32>
    tpu.vector_store %arg5[%c17, %c0_1], %0 {strides = array<i32>} : memref<36x128xf32, #tpu.memory_space<vmem>>, vector<1x128xf32>,
    %c0_2 = arith.constant 0 : index
    %c0_3 = arith.constant 0 : index
    %c0_4 = arith.constant 0 : index
    %3 = vector.load %arg1[%c0_2, %c0_3, %c0_4] : memref<2x16x128xf32, #tpu.memory_space<vmem>>, vector<1x16x128xf32>
    %4 = vector.shape_cast %3 : vector<1x16x128xf32> to vector<16x128xf32>
    %c1 = arith.constant 1 : index
    %c0_5 = arith.constant 0 : index
    %5 = vector.load %arg5[%c1, %c0_5] : memref<36x128xf32, #tpu.memory_space<vmem>>, vector<16x128xf32>
    tpu.vector_store %arg5[%c1, %c0_5], %4 {strides = array<i32>} : memref<36x128xf32, #tpu.memory_space<vmem>>, vector<16x128xf32>,
    %c18 = arith.constant 18 : index
    %c0_6 = arith.constant 0 : index
    %6 = vector.load %arg5[%c18, %c0_6] : memref<36x128xf32, #tpu.memory_space<vmem>>, vector<1x128xf32>
    tpu.vector_store %arg5[%c18, %c0_6], %0 {strides = array<i32>} : memref<36x128xf32, #tpu.memory_space<vmem>>, vector<1x128xf32>,
    %c35 = arith.constant 35 : index
    %c0_7 = arith.constant 0 : index
    %7 = vector.load %arg5[%c35, %c0_7] : memref<36x128xf32, #tpu.memory_space<vmem>>, vector<1x128xf32>
    tpu.vector_store %arg5[%c35, %c0_7], %0 {strides = array<i32>} : memref<36x128xf32, #tpu.memory_space<vmem>>, vector<1x128xf32>,
    %c1_8 = arith.constant 1 : index
    %c0_9 = arith.constant 0 : index
    %c0_10 = arith.constant 0 : index
    %8 = vector.load %arg1[%c1_8, %c0_9, %c0_10] : memref<2x16x128xf32, #tpu.memory_space<vmem>>, vector<1x16x128xf32>
    %9 = vector.shape_cast %8 : vector<1x16x128xf32> to vector<16x128xf32>
    %c19 = arith.constant 19 : index
    %c0_11 = arith.constant 0 : index
    %10 = vector.load %arg5[%c19, %c0_11] : memref<36x128xf32, #tpu.memory_space<vmem>>, vector<16x128xf32>
    tpu.vector_store %arg5[%c19, %c0_11], %9 {strides = array<i32>} : memref<36x128xf32, #tpu.memory_space<vmem>>, vector<16x128xf32>,
    %c0_12 = arith.constant 0 : index
    %c0_13 = arith.constant 0 : index
    %11 = vector.load %arg5[%c0_12, %c0_13] : memref<36x128xf32, #tpu.memory_space<vmem>>, vector<36x128xf32>
    %12 = arith.truncf %11 : vector<36x128xf32> to vector<36x128xbf16>
    %13 = vector.extract_strided_slice %12 {offsets = [0, 0], sizes = [34, 128], strides = [1, 1]} : vector<36x128xbf16> to vector<34x128xbf16>
    %14 = vector.extract_strided_slice %12 {offsets = [1, 0], sizes = [34, 128], strides = [1, 1]} : vector<36x128xbf16> to vector<34x128xbf16>
    %15 = vector.extract_strided_slice %12 {offsets = [2, 0], sizes = [34, 128], strides = [1, 1]} : vector<36x128xbf16> to vector<34x128xbf16>
    %16 = tpu.concatenate %13, %14, %15 in 1 : vector<34x128xbf16>, vector<34x128xbf16>, vector<34x128xbf16> -> vector<34x384xbf16>
    %c0_14 = arith.constant 0 : index
    %c0_15 = arith.constant 0 : index
    %c0_16 = arith.constant 0 : index
    %17 = vector.load %arg2[%c0_14, %c0_15, %c0_16] : memref<3x384x128xbf16, #tpu.memory_space<vmem>>, vector<1x384x128xbf16>
    %18 = vector.shape_cast %17 : vector<1x384x128xbf16> to vector<384x128xbf16>
    %cst_17 = arith.constant dense<0.000000e+00> : vector<34x128xf32>
    %19 = tpu.matmul %16, %18, %cst_17 {dimension_numbers = #tpu.dot_dimension_numbers<[1], [0], [0], [1], [0, 0, 1, 1], [], []>} : vector<34x384xbf16>, vector<384x128xbf16>, vector<34x128xf32> -> vector<34x128xf32>
    %c0_18 = arith.constant 0 : index
    %c0_19 = arith.constant 0 : index
    %c0_20 = arith.constant 0 : index
    %20 = vector.load %arg3[%c0_18, %c0_19, %c0_20] : memref<3x1x128xf32, #tpu.memory_space<vmem>>, vector<1x1x128xf32>
    %21 = vector.shape_cast %20 : vector<1x1x128xf32> to vector<1x128xf32>
    %22 = vector.broadcast %21 : vector<1x128xf32> to vector<34x128xf32>
    %23 = arith.addf %19, %22 : vector<34x128xf32>
    %cst_21 = arith.constant 0.000000e+00 : f32
    %24 = vector.broadcast %cst_21 : f32 to vector<34x128xf32>
    %25 = arith.maximumf %23, %24 : vector<34x128xf32>
    %26 = vector.extract_strided_slice %25 {offsets = [0, 0], sizes = [16, 128], strides = [1, 1]} : vector<34x128xf32> to vector<16x128xf32>
    %c1_22 = arith.constant 1 : index
    %c0_23 = arith.constant 0 : index
    %27 = vector.load %arg5[%c1_22, %c0_23] : memref<36x128xf32, #tpu.memory_space<vmem>>, vector<16x128xf32>
    tpu.vector_store %arg5[%c1_22, %c0_23], %26 {strides = array<i32>} : memref<36x128xf32, #tpu.memory_space<vmem>>, vector<16x128xf32>,
    %28 = vector.extract_strided_slice %25 {offsets = [18, 0], sizes = [16, 128], strides = [1, 1]} : vector<34x128xf32> to vector<16x128xf32>
    %c19_24 = arith.constant 19 : index
    %c0_25 = arith.constant 0 : index
    %29 = vector.load %arg5[%c19_24, %c0_25] : memref<36x128xf32, #tpu.memory_space<vmem>>, vector<16x128xf32>
    tpu.vector_store %arg5[%c19_24, %c0_25], %28 {strides = array<i32>} : memref<36x128xf32, #tpu.memory_space<vmem>>, vector<16x128xf32>,
    %c0_26 = arith.constant 0 : index
    %c0_27 = arith.constant 0 : index
    %30 = vector.load %arg5[%c0_26, %c0_27] : memref<36x128xf32, #tpu.memory_space<vmem>>, vector<36x128xf32>
    %31 = arith.truncf %30 : vector<36x128xf32> to vector<36x128xbf16>
    %32 = vector.extract_strided_slice %31 {offsets = [0, 0], sizes = [34, 128], strides = [1, 1]} : vector<36x128xbf16> to vector<34x128xbf16>
    %33 = vector.extract_strided_slice %31 {offsets = [1, 0], sizes = [34, 128], strides = [1, 1]} : vector<36x128xbf16> to vector<34x128xbf16>
    %34 = vector.extract_strided_slice %31 {offsets = [2, 0], sizes = [34, 128], strides = [1, 1]} : vector<36x128xbf16> to vector<34x128xbf16>
    %35 = tpu.concatenate %32, %33, %34 in 1 : vector<34x128xbf16>, vector<34x128xbf16>, vector<34x128xbf16> -> vector<34x384xbf16>
    %c1_28 = arith.constant 1 : index
    %c0_29 = arith.constant 0 : index
    %c0_30 = arith.constant 0 : index
    %36 = vector.load %arg2[%c1_28, %c0_29, %c0_30] : memref<3x384x128xbf16, #tpu.memory_space<vmem>>, vector<1x384x128xbf16>
    %37 = vector.shape_cast %36 : vector<1x384x128xbf16> to vector<384x128xbf16>
    %cst_31 = arith.constant dense<0.000000e+00> : vector<34x128xf32>
    %38 = tpu.matmul %35, %37, %cst_31 {dimension_numbers = #tpu.dot_dimension_numbers<[1], [0], [0], [1], [0, 0, 1, 1], [], []>} : vector<34x384xbf16>, vector<384x128xbf16>, vector<34x128xf32> -> vector<34x128xf32>
    %c1_32 = arith.constant 1 : index
    %c0_33 = arith.constant 0 : index
    %c0_34 = arith.constant 0 : index
    %39 = vector.load %arg3[%c1_32, %c0_33, %c0_34] : memref<3x1x128xf32, #tpu.memory_space<vmem>>, vector<1x1x128xf32>
    %40 = vector.shape_cast %39 : vector<1x1x128xf32> to vector<1x128xf32>
    %41 = vector.broadcast %40 : vector<1x128xf32> to vector<34x128xf32>
    %42 = arith.addf %38, %41 : vector<34x128xf32>
    %cst_35 = arith.constant 0.000000e+00 : f32
    %43 = vector.broadcast %cst_35 : f32 to vector<34x128xf32>
    %44 = arith.maximumf %42, %43 : vector<34x128xf32>
    %45 = vector.extract_strided_slice %44 {offsets = [0, 0], sizes = [16, 128], strides = [1, 1]} : vector<34x128xf32> to vector<16x128xf32>
    %c1_36 = arith.constant 1 : index
    %c0_37 = arith.constant 0 : index
    %46 = vector.load %arg5[%c1_36, %c0_37] : memref<36x128xf32, #tpu.memory_space<vmem>>, vector<16x128xf32>
    tpu.vector_store %arg5[%c1_36, %c0_37], %45 {strides = array<i32>} : memref<36x128xf32, #tpu.memory_space<vmem>>, vector<16x128xf32>,
    %47 = vector.extract_strided_slice %44 {offsets = [18, 0], sizes = [16, 128], strides = [1, 1]} : vector<34x128xf32> to vector<16x128xf32>
    %c19_38 = arith.constant 19 : index
    %c0_39 = arith.constant 0 : index
    %48 = vector.load %arg5[%c19_38, %c0_39] : memref<36x128xf32, #tpu.memory_space<vmem>>, vector<16x128xf32>
    tpu.vector_store %arg5[%c19_38, %c0_39], %47 {strides = array<i32>} : memref<36x128xf32, #tpu.memory_space<vmem>>, vector<16x128xf32>,
    %c0_40 = arith.constant 0 : index
    %c0_41 = arith.constant 0 : index
    %49 = vector.load %arg5[%c0_40, %c0_41] : memref<36x128xf32, #tpu.memory_space<vmem>>, vector<36x128xf32>
    %50 = arith.truncf %49 : vector<36x128xf32> to vector<36x128xbf16>
    %51 = vector.extract_strided_slice %50 {offsets = [0, 0], sizes = [34, 128], strides = [1, 1]} : vector<36x128xbf16> to vector<34x128xbf16>
    %52 = vector.extract_strided_slice %50 {offsets = [1, 0], sizes = [34, 128], strides = [1, 1]} : vector<36x128xbf16> to vector<34x128xbf16>
    %53 = vector.extract_strided_slice %50 {offsets = [2, 0], sizes = [34, 128], strides = [1, 1]} : vector<36x128xbf16> to vector<34x128xbf16>
    %54 = tpu.concatenate %51, %52, %53 in 1 : vector<34x128xbf16>, vector<34x128xbf16>, vector<34x128xbf16> -> vector<34x384xbf16>
    %c2 = arith.constant 2 : index
    %c0_42 = arith.constant 0 : index
    %c0_43 = arith.constant 0 : index
    %55 = vector.load %arg2[%c2, %c0_42, %c0_43] : memref<3x384x128xbf16, #tpu.memory_space<vmem>>, vector<1x384x128xbf16>
    %56 = vector.shape_cast %55 : vector<1x384x128xbf16> to vector<384x128xbf16>
    %cst_44 = arith.constant dense<0.000000e+00> : vector<34x128xf32>
    %57 = tpu.matmul %54, %56, %cst_44 {dimension_numbers = #tpu.dot_dimension_numbers<[1], [0], [0], [1], [0, 0, 1, 1], [], []>} : vector<34x384xbf16>, vector<384x128xbf16>, vector<34x128xf32> -> vector<34x128xf32>
    %c2_45 = arith.constant 2 : index
    %c0_46 = arith.constant 0 : index
    %c0_47 = arith.constant 0 : index
    %58 = vector.load %arg3[%c2_45, %c0_46, %c0_47] : memref<3x1x128xf32, #tpu.memory_space<vmem>>, vector<1x1x128xf32>
    %59 = vector.shape_cast %58 : vector<1x1x128xf32> to vector<1x128xf32>
    %60 = vector.broadcast %59 : vector<1x128xf32> to vector<34x128xf32>
    %61 = arith.addf %57, %60 : vector<34x128xf32>
    %cst_48 = arith.constant 0.000000e+00 : f32
    %62 = vector.broadcast %cst_48 : f32 to vector<34x128xf32>
    %63 = arith.maximumf %61, %62 : vector<34x128xf32>
    %64 = vector.extract_strided_slice %63 {offsets = [0, 0], sizes = [16, 128], strides = [1, 1]} : vector<34x128xf32> to vector<16x128xf32>
    %c0_49 = arith.constant 0 : index
    %c0_50 = arith.constant 0 : index
    %c0_51 = arith.constant 0 : index
    %65 = vector.load %arg4[%c0_49, %c0_50, %c0_51] : memref<2x16x128xf32, #tpu.memory_space<vmem>>, vector<1x16x128xf32>
    %66 = vector.shape_cast %65 : vector<1x16x128xf32> to vector<16x128xf32>
    %67 = vector.shape_cast %64 : vector<16x128xf32> to vector<1x16x128xf32>
    tpu.vector_store %arg4[%c0_49, %c0_50, %c0_51], %67 {strides = array<i32>} : memref<2x16x128xf32, #tpu.memory_space<vmem>>, vector<1x16x128xf32>,
    %68 = vector.extract_strided_slice %63 {offsets = [18, 0], sizes = [16, 128], strides = [1, 1]} : vector<34x128xf32> to vector<16x128xf32>
    %c1_52 = arith.constant 1 : index
    %c0_53 = arith.constant 0 : index
    %c0_54 = arith.constant 0 : index
    %69 = vector.load %arg4[%c1_52, %c0_53, %c0_54] : memref<2x16x128xf32, #tpu.memory_space<vmem>>, vector<1x16x128xf32>
    %70 = vector.shape_cast %69 : vector<1x16x128xf32> to vector<16x128xf32>
    %71 = vector.shape_cast %68 : vector<16x128xf32> to vector<1x16x128xf32>
    tpu.vector_store %arg4[%c1_52, %c0_53, %c0_54], %71 {strides = array<i32>} : memref<2x16x128xf32, #tpu.memory_space<vmem>>, vector<1x16x128xf32>,
    return
  }
  func.func @transform_0(%arg0: i32) -> (i32, i32, i32) {
    %c0_i32 = arith.constant 0 : i32
    %c0_i32_0 = arith.constant 0 : i32
    %c0_i32_1 = arith.constant 0 : i32
    return %arg0, %c0_i32, %c0_i32_0 : i32, i32, i32
  }
  func.func @transform_1(%arg0: i32) -> (i32, i32, i32) {
    %c0_i32 = arith.constant 0 : i32
    %c0_i32_0 = arith.constant 0 : i32
    %c0_i32_1 = arith.constant 0 : i32
    %c0_i32_2 = arith.constant 0 : i32
    return %c0_i32, %c0_i32_0, %c0_i32_1 : i32, i32, i32
  }
  func.func @transform_2(%arg0: i32) -> (i32, i32, i32) {
    %c0_i32 = arith.constant 0 : i32
    %c0_i32_0 = arith.constant 0 : i32
    %c0_i32_1 = arith.constant 0 : i32
    %c0_i32_2 = arith.constant 0 : i32
    return %c0_i32, %c0_i32_0, %c0_i32_1 : i32, i32, i32
  }
  func.func @transform_3(%arg0: i32) -> (i32, i32, i32) {
    %c0_i32 = arith.constant 0 : i32
    %c0_i32_0 = arith.constant 0 : i32
    %c0_i32_1 = arith.constant 0 : i32
    return %arg0, %c0_i32, %c0_i32_0 : i32, i32, i32
  }
}

</mosaic_0001>

<bundles_post_ra>
// kernel: model_forward.1
= control target key start
LH: loop header
LB: loop body
LE: loop exit
PB: predicated region body
PF: predicated region fallthrough
CT: control target
= control target key end

     0   :  { %v1526_v1 = vmov 0.0   ;;  %vm80_vm0 = vcmask 1046528   ;;  %vm53_vm1 = vsmask.f32 7424  ;;  %s1821_s1 = inlined_call_operand.vmem [shape: bf16[3,384,128], index: 1, kind: input, shape index: {}]   ;;  %s1822_s0 = inlined_call_operand.vmem [shape: f32[2,16,128], index: 0, kind: input, shape index: {}]   ;;  %s1823_s2 = inlined_call_operand.vmem [shape: f32[3,1,128], index: 2, kind: input, shape index: {}]   ;;  %s1824_s3 = inlined_call_operand.vmem [shape: f32[2,16,128], index: 3, kind: output, shape index: {}]  }
   0x1   :  { %v1441_v0 = vld [vmem:[%s1821_s1 + $0x38] sm:$0xff]  ;;  %21 = vst [vmem:[#allocation2 + $0x23] sm:$0x1] %v1526_v1  ;;  %v1440_v3 = vld [vmem:[%s1821_s1 + $0x30] sm:$0xff]  ;;  %v1439_v5 = vld [vmem:[%s1821_s1 + $0x28] sm:$0xff] }
   0x2   :  { %v1457_v2 = vld [vmem:[%s1821_s1 + $0xb8] sm:$0xff]  ;;  %14 = vst [vmem:[#allocation2] sm:$0x1] %v1526_v1  ;;  %1506 = vmatpush.bf16.msra.mxu1 %v1441_v0  ;;  %285 = vmatpush.bf16.msra.mxu0 %v1441_v0  ;;  %v1456_v4 = vld [vmem:[%s1821_s1 + $0xb0] sm:$0xff]  ;;  %v16_v7 = vld [vmem:[%s1822_s0] sm:$0xff] }
   0x3   :  { %15 = vst [vmem:[#allocation2 + $0x11] sm:$0x1] %v1526_v1  ;;  %331 = vmatpush.bf16.msra.mxu2 %v1457_v2  ;;  %v1044_v6 = vld [vmem:[%s1822_s0 + $0x18] sm:$0xff]  ;;  %v17_v8 = vld [vmem:[%s1822_s0 + $0x8] sm:$0xff]  ;;  %v1043_v9 = vld [vmem:[%s1822_s0 + $0x10] sm:$0xff] }
   0x4   :  { %20 = vst [vmem:[#allocation2 + $0x12] sm:$0x1] %v1526_v1  ;;  %v1455_v10 = vld [vmem:[%s1821_s1 + $0xa8] sm:$0xff]  ;;  %v1438_v11 = vld [vmem:[%s1821_s1 + $0x20] sm:$0xff]  ;;  %v1437_v13 = vld [vmem:[%s1821_s1 + $0x18] sm:$0xff] }
   0x5   :  { %26 = vst [vmem:[#allocation2 + $0x1b] sm:$0xff] %v1044_v6  ;;  %v1454_v12 = vld [vmem:[%s1821_s1 + $0xa0] sm:$0xff]  ;;  %v1453_v15 = vld [vmem:[%s1821_s1 + $0x98] sm:$0xff]  ;;  %v1436_v23 = vld [vmem:[%s1821_s1 + $0x10] sm:$0xff] }
   0x6   :  { %1507 = vmatpush.bf16.msra.mxu1 %v1440_v3  ;;  %286 = vmatpush.bf16.msra.mxu0 %v1440_v3  ;;  %18 = vst [vmem:[#allocation2 + $0x1] sm:$0xff] %v16_v7  ;;  %v1452_v25 = vld [vmem:[%s1821_s1 + $0x90] sm:$0xff]  ;;  %v1435_v31 = vld [vmem:[%s1821_s1 + $0x8] sm:$0xff]  ;;  %v1434_v36 = vld [vmem:[%s1821_s1] sm:$0xff] }
   0x7   :  { %332 = vmatpush.bf16.msra.mxu2 %v1456_v4  ;;  %19 = vst [vmem:[#allocation2 + $0x9] sm:$0xff] %v17_v8  ;;  %v1451_v32 = vld [vmem:[%s1821_s1 + $0x88] sm:$0xff]  ;;  %v1449_v37 = vld [vmem:[%s1821_s1 + $0x78] sm:$0xff]  ;;  %v1450_v38 = vld [vmem:[%s1821_s1 + $0x80] sm:$0xff] }
   0x8   :  { %25 = vst [vmem:[#allocation2 + $0x13] sm:$0xff] %v1043_v9  ;;  %v1448_v42 = vld [vmem:[%s1821_s1 + $0x70] sm:$0xff]  ;;  %v1447_v44 = vld [vmem:[%s1821_s1 + $0x68] sm:$0xff]  ;;  %v1446_v45 = vld [vmem:[%s1821_s1 + $0x60] sm:$0xff] }
   0x9   :  { %v1445_v46 = vld [vmem:[%s1821_s1 + $0x58] sm:$0xff]  ;;  %v1444_v48 = vld [vmem:[%s1821_s1 + $0x50] sm:$0xff]  ;;  %v1443_v51 = vld [vmem:[%s1821_s1 + $0x48] sm:$0xff] }
   0xa   :  { %1508 = vmatpush.bf16.msra.mxu1 %v1439_v5  ;;  %287 = vmatpush.bf16.msra.mxu0 %v1439_v5  ;;  %v1442_v55 = vld [vmem:[%s1821_s1 + $0x40] sm:$0xff]  ;;  %v1465_v2 = vld [vmem:[%s1821_s1 + $0xf8] sm:$0xff]  ;;  %v1464_v3 = vld [vmem:[%s1821_s1 + $0xf0] sm:$0xff] }
   0xb   :  { %333 = vmatpush.bf16.msra.mxu2 %v1455_v10  ;;  %622 = vmatpush.bf16.msra.mxu3 %v1465_v2  ;;  %v1463_v5 = vld [vmem:[%s1821_s1 + $0xe8] sm:$0xff]  ;;  %v1481_v6 = vld [vmem:[%s1821_s1 + $0x178] sm:$0xff]  ;;  %v1462_v7 = vld [vmem:[%s1821_s1 + $0xe0] sm:$0xff] }
   0xc   :  { %v31_v24 = vld [vmem:[#allocation2 + $0x20] sm:$0xf]  ;;  %v1461_v10 = vld [vmem:[%s1821_s1 + $0xd8] sm:$0xff] }
   0xd   :  { %v27_v14 = vld [vmem:[#allocation2] sm:$0xff]  ;;  %v36_v30 = vpack.c.bf16 %v31_v24, %v31_v24 }
   0xe   :  { %1509 = vmatpush.bf16.msra.mxu1 %v1438_v11  ;;  %288 = vmatpush.bf16.msra.mxu0 %v1438_v11  ;;  %v28_v16 = vld [vmem:[#allocation2 + $0x8] sm:$0xff]  ;;  %v32_v17 = vpack.c.bf16 %v27_v14, %v27_v14  ;;  %v1480_v11 = vld [vmem:[%s1821_s1 + $0x170] sm:$0xff] }
   0xf   :  { %334 = vmatpush.bf16.msra.mxu2 %v1454_v12  ;;  %v29_v18 = vld [vmem:[#allocation2 + $0x10] sm:$0xff]  ;;  %v30_v19 = vld [vmem:[#allocation2 + $0x18] sm:$0xff]  ;;  %v33_v20 = vpack.c.bf16 %v28_v16, %v28_v16  ;;  %v46_v35 = vunpack.c.l.b16 %v36_v30  ;;  %623 = vmatpush.bf16.msra.mxu3 %v1464_v3 }
  0x10   :  { %v34_v21 = vpack.c.bf16 %v29_v18, %v29_v18  ;;  %v35_v22 = vpack.c.bf16 %v30_v19, %v30_v19  ;;  %v42_v26 = vunpack.c.l.b16 %v32_v17  ;;  %v1460_v12 = vld [vmem:[%s1821_s1 + $0xd0] sm:$0xff]  ;;  %v1479_v18 = vld [vmem:[%s1821_s1 + $0x168] sm:$0xff]  ;;  %v1458_v19 = vld [vmem:[%s1821_s1 + $0xc0] sm:$0xff] }
  0x11   :  { %v43_v27 = vunpack.c.l.b16 %v33_v20  ;;  %v49_v41 = vpack.c.b16 %v46_v35, %v46_v35  ;;  %v1472_v16 = vld [vmem:[%s1821_s1 + $0x130] sm:$0xff]  ;;  %v1478_v20 = vld [vmem:[%s1821_s1 + $0x160] sm:$0xff]  ;;  %v1469_v30 = vld [vmem:[%s1821_s1 + $0x118] sm:$0xff] }
  0x12   :  { %1510 = vmatpush.bf16.msra.mxu1 %v1437_v13  ;;  %289 = vmatpush.bf16.msra.mxu0 %v1437_v13  ;;  %v44_v28 = vunpack.c.l.b16 %v34_v21  ;;  %v45_v29 = vunpack.c.l.b16 %v35_v22  ;;  %v1473_v13 = vld [vmem:[%s1821_s1 + $0x138] sm:$0xff]  ;;  %v1471_v21 = vld [vmem:[%s1821_s1 + $0x128] sm:$0xff]  ;;  %v1468_v35 = vld [vmem:[%s1821_s1 + $0x110] sm:$0xff] }
  0x13   :  { %335 = vmatpush.bf16.msra.mxu2 %v1453_v15  ;;  %v47_v33 = vpack.c.b16 %v43_v27, %v42_v26  ;;  %v84_v47 = vrot.slane %v49_v41, 1  ;;  %v70_v60 = vshll.u32 %v49_v41, 16  ;;  %v74_v0 = vshrl.u32 %v49_v41, 16  ;;  %624 = vmatpush.bf16.msra.mxu3 %v1463_v5  ;;  %v1459_v15 = vld [vmem:[%s1821_s1 + $0xc8] sm:$0xff]  ;;  %v1477_v26 = vld [vmem:[%s1821_s1 + $0x158] sm:$0xff] }
  0x14   :  { %v48_v34 = vpack.c.b16 %v45_v29, %v44_v28 }
  0x15   :  { %v81_v39 = vrot.slane %v47_v33, 1  ;;  %v57_v49 = vshll.u32 %v47_v33, 16  ;;  %v55_v52 = vshrl.u32 %v47_v33, 16  ;;  %v72_v62 = vrot.slane %v70_v60, 1 }
  0x16   :  { %1511 = vmatpush.bf16.msra.mxu1 %v1436_v23  ;;  %290 = vmatpush.bf16.msra.mxu0 %v1436_v23  ;;  %v82_v40 = vrot.slane %v48_v34, 1  ;;  %v62_v54 = vshll.u32 %v48_v34, 16  ;;  %v66_v59 = vshrl.u32 %v48_v34, 16  ;;  %v1523_v23 = vld [vmem:[%s1823_s2] ss:$0 sm:$0xff] }
  0x17   :  { %336 = vmatpush.bf16.msra.mxu2 %v1452_v25  ;;  %v59_v53 = vrot.slane %v57_v49, 1  ;;  %v76_v1 = vor.u32 %v74_v0, %v72_v62  ;;  %625 = vmatpush.bf16.msra.mxu3 %v1462_v7  ;;  %v1470_v25 = vld [vmem:[%s1821_s1 + $0x120] sm:$0xff] }
  0x18   :  { %v83_v43 = vsel %vm80_vm0, %v81_v39, %v82_v40  ;;  %v85_v50 = vsel %vm80_vm0, %v82_v40, %v84_v47  ;;  %v64_v57 = vrot.slane %v62_v54, 1  ;;  %v1467_v39 = vld [vmem:[%s1821_s1 + $0x108] sm:$0xff] }
  0x19   :  { %v60_v56 = vor.u32 %v59_v53, %v55_v52 }
  0x1a   :  { %1512 = vmatpush.bf16.msra.mxu1 %v1435_v31  ;;  %291 = vmatpush.bf16.msra.mxu0 %v1435_v31  ;;  %v68_v61 = vor.u32 %v66_v59, %v64_v57 }
  0x1b   :  { %337 = vmatpush.bf16.msra.mxu2 %v1451_v32  ;;  %v65_v58 = vsel %vm53_vm1, %v60_v56, %v64_v57  ;;  %626 = vmatpush.bf16.msra.mxu3 %v1461_v10 }
  0x1c   :  { %v73_v63 = vsel %vm53_vm1, %v68_v61, %v72_v62 }
  0x1e   :  { %1513 = vmatpush.bf16.msra.mxu1 %v1434_v36  ;;  %292 = vmatpush.bf16.msra.mxu0 %v1434_v36 }
  0x1f   :  { %338 = vmatpush.bf16.msra.mxu2 %v1450_v38  ;;  %627 = vmatpush.bf16.msra.mxu3 %v1460_v12 }
  0x21   :  { %303 = vmatmul.bf16.vlgmr.msra.gmra.mxu1 %v49_v41  ;;  %293 = vmatmul.bf16.vlgmr.msra.gmra.mxu0 %v47_v33  ;;  %v1476_v33 = vld [vmem:[%s1821_s1 + $0x150] sm:$0xff] }
  0x22   :  { %308 = vmatpush.bf16.msrb.mxu1 %v1449_v37  ;;  %339 = vmatmul.bf16.vlgmr.msra.gmra.mxu2 %v83_v43  ;;  %v1475_v37 = vld [vmem:[%s1821_s1 + $0x148] sm:$0xff] }
  0x23   :  { %645 = vmatpush.bf16.msrb.mxu0 %v1473_v13  ;;  %628 = vmatpush.bf16.msra.mxu3 %v1459_v15 }
  0x26   :  { %309 = vmatpush.bf16.msrb.mxu1 %v1448_v42 }
  0x27   :  { %646 = vmatpush.bf16.msrb.mxu0 %v1472_v16  ;;  %629 = vmatpush.bf16.msra.mxu3 %v1458_v19 }
  0x2a   :  { %310 = vmatpush.bf16.msrb.mxu1 %v1447_v44  ;;  %v1474_v44 = vld [vmem:[%s1821_s1 + $0x140] sm:$0xff] }
  0x2b   :  { %647 = vmatpush.bf16.msrb.mxu0 %v1471_v21 }
  0x2e   :  { %311 = vmatpush.bf16.msrb.mxu1 %v1446_v45 }
  0x2f   :  { %648 = vmatpush.bf16.msrb.mxu0 %v1470_v25 }
  0x31   :  { %298 = vmatmul.bf16.gmra.mxu0 %v48_v34 }
  0x32   :  { %312 = vmatpush.bf16.msrb.mxu1 %v1445_v46  ;;  %344 = vmatmul.bf16.gmra.mxu2 %v85_v50 }
  0x33   :  { %649 = vmatpush.bf16.msrb.mxu0 %v1469_v30 }
  0x36   :  { %313 = vmatpush.bf16.msrb.mxu1 %v1444_v48 }
  0x37   :  { %650 = vmatpush.bf16.msrb.mxu0 %v1468_v35 }
  0x3a   :  { %314 = vmatpush.bf16.msrb.mxu1 %v1443_v51 }
  0x3b   :  { %651 = vmatpush.bf16.msrb.mxu0 %v1467_v39  ;;  %v1488_v39 = vld [vmem:[%s1821_s1 + $0x1b0] sm:$0xff] }
  0x3e   :  { %315 = vmatpush.bf16.msrb.mxu1 %v1442_v55 }
  0x41   :  { %316 = vmatmul.bf16.vlgmr.msrb.gmra.mxu1 %v65_v58 }
  0x42   :  { %349 = vmatmul.bf16.gmra.mxu2 %v84_v47  ;;  %668 = vmatpush.bf16.msra.mxu1 %v1481_v6  ;;  %v1466_v47 = vld [vmem:[%s1821_s1 + $0x100] sm:$0xff] }
  0x43   :  { %652 = vmatpush.bf16.msrb.mxu0 %v1466_v47 }
  0x46   :  { %669 = vmatpush.bf16.msra.mxu1 %v1480_v11 }
  0x4a   :  { %670 = vmatpush.bf16.msra.mxu1 %v1479_v18 }
  0x4e   :  { %671 = vmatpush.bf16.msra.mxu1 %v1478_v20 }
  0x51   :  { %321 = vmatmul.bf16.gmra.mxu1 %v73_v63 }
  0x52   :  { %672 = vmatpush.bf16.msra.mxu1 %v1477_v26 }
  0x56   :  { %673 = vmatpush.bf16.msra.mxu1 %v1476_v33 }
  0x5a   :  { %674 = vmatpush.bf16.msra.mxu1 %v1475_v37 }
  0x5e   :  { %675 = vmatpush.bf16.msra.mxu1 %v1474_v44  ;;  %v1496_v44 = vld [vmem:[%s1821_s1 + $0x1f0] sm:$0xff] }
  0x61   :  { %326 = vmatmul.bf16.gmra.mxu1 %v76_v1 }
  0x9e   :  { %v1641_v4 = vpop.f32.mrf.mxu1  ;;  %v294_v17 = vpop.f32.mrf.mxu0 }
  0x9f   :  { %v295_v24 = vadd.f32 %v1523_v23, %v294_v17  ;;  %v305_v2 = vadd.f32 %v1523_v23, %v1641_v4 }
  0xa5   :  { %v340_v8 = vpop.f32.mrf.mxu2 }
  0xa6   :  { %v306_v9 = vpop.f32.mrf.mxu1  ;;  %v296_v27 = vpop.f32.mrf.mxu0 }
  0xa7   :  { %v297_v36 = vadd.f32 %v1523_v23, %v296_v27 }
  0xad   :  { %v342_v14 = vpop.f32.mrf.mxu2 }
  0xae   :  { %v299_v41 = vpop.f32.mrf.mxu0 }
  0xaf   :  { %v300_v45 = vadd.f32 %v1523_v23, %v299_v41  ;;  %v1497_v41 = vld [vmem:[%s1821_s1 + $0x1f8] sm:$0xff] }
  0xb0   :  { %982 = vmatpush.bf16.msrb.mxu3 %v1497_v41 }
  0xb4   :  { %983 = vmatpush.bf16.msrb.mxu3 %v1496_v44 }
  0xb5   :  { %v345_v22 = vpop.f32.mrf.mxu2 }
  0xb6   :  { %v301_v53 = vpop.f32.mrf.mxu0 }
  0xb7   :  { %v302_v57 = vadd.f32 %v1523_v23, %v301_v53  ;;  %v1482_v53 = vld [vmem:[%s1821_s1 + $0x180] sm:$0xff] }
  0xbd   :  { %v347_v31 = vpop.f32.mrf.mxu2 }
  0xbe   :  { %v317_v28 = vpop.f32.mrf.mxu1 }
  0xbf   :  { %v318_v29 = vadd.f32 %v317_v28, %v295_v24 }
  0xc1   :  { %v341_v32 = vadd.f32 %v340_v8, %v318_v29 }
  0xc3   :  { %v354_v34 = vmax.f32 %v341_v32, 0.0 }
  0xc5   :  { %359 = vst [vmem:[#allocation2 + $0x1] sm:$0xff] %v354_v34  ;;  %v350_v42 = vpop.f32.mrf.mxu2 }
  0xc6   :  { %v319_v38 = vpop.f32.mrf.mxu1 }
  0xc7   :  { %v320_v40 = vadd.f32 %v319_v38, %v297_v36  ;;  %v1489_v38 = vld [vmem:[%s1821_s1 + $0x1b8] sm:$0xff] }
  0xc8   :  { %959 = vmatpush.bf16.msrb.mxu2 %v1489_v38 }
  0xc9   :  { %v343_v43 = vadd.f32 %v342_v14, %v320_v40  ;;  %v1487_v40 = vld [vmem:[%s1821_s1 + $0x1a8] sm:$0xff] }
  0xcb   :  { %v355_v46 = vmax.f32 %v343_v43, 0.0  ;;  %v1485_v43 = vld [vmem:[%s1821_s1 + $0x198] sm:$0xff] }
  0xcc   :  { %v364_v50 = vld [vmem:[#allocation2] sm:$0xff]  ;;  %960 = vmatpush.bf16.msrb.mxu2 %v1488_v39 }
  0xcd   :  { %360 = vst [vmem:[#allocation2 + $0x9] sm:$0xff] %v355_v46  ;;  %v352_v51 = vpop.f32.mrf.mxu2  ;;  %v369_v55 = vpack.c.bf16 %v364_v50, %v364_v50  ;;  %v1484_v46 = vld [vmem:[%s1821_s1 + $0x190] sm:$0xff]  ;;  %v1483_v50 = vld [vmem:[%s1821_s1 + $0x188] sm:$0xff] }
  0xce   :  { %v322_v48 = vpop.f32.mrf.mxu1  ;;  %v1494_v51 = vld [vmem:[%s1821_s1 + $0x1e0] sm:$0xff] }
  0xcf   :  { %v323_v49 = vadd.f32 %v322_v48, %v300_v45  ;;  %v379_v61 = vunpack.c.l.b16 %v369_v55  ;;  %v1505_v45 = vld [vmem:[%s1821_s1 + $0x238] sm:$0xff]  ;;  %v1495_v48 = vld [vmem:[%s1821_s1 + $0x1e8] sm:$0xff]  ;;  %v1765_v55 = vld [vmem:[%s1823_s2 + $0x1] ss:$0 sm:$0xff] }
  0xd0   :  { %961 = vmatpush.bf16.msrb.mxu2 %v1487_v40  ;;  %1005 = vmatpush.bf16.msra.mxu0 %v1505_v45 }
  0xd1   :  { %v346_v52 = vadd.f32 %v345_v22, %v323_v49  ;;  %v1504_v49 = vld [vmem:[%s1821_s1 + $0x230] sm:$0xff]  ;;  %984 = vmatpush.bf16.msrb.mxu3 %v1495_v48 }
  0xd3   :  { %v356_v54 = vmax.f32 %v346_v52, 0.0  ;;  %v1503_v52 = vld [vmem:[%s1821_s1 + $0x228] sm:$0xff] }
  0xd4   :  { %v365_v56 = vld [vmem:[#allocation2 + $0x8] sm:$0xff]  ;;  %1006 = vmatpush.bf16.msra.mxu0 %v1504_v49 }
  0xd5   :  { %361 = vst [vmem:[#allocation2 + $0x11] sm:$0xfc] %v356_v54  ;;  %v370_v58 = vpack.c.bf16 %v365_v56, %v365_v56  ;;  %985 = vmatpush.bf16.msrb.mxu3 %v1494_v51  ;;  %v1502_v56 = vld [vmem:[%s1821_s1 + $0x220] sm:$0xff] }
  0xd6   :  { %v324_v59 = vpop.f32.mrf.mxu1 }
  0xd7   :  { %v325_v60 = vadd.f32 %v324_v59, %v302_v57  ;;  %v380_v62 = vunpack.c.l.b16 %v370_v58  ;;  %v1493_v59 = vld [vmem:[%s1821_s1 + $0x1d8] sm:$0xff] }
  0xd8   :  { %1007 = vmatpush.bf16.msra.mxu0 %v1503_v52 }
  0xd9   :  { %v348_v63 = vadd.f32 %v347_v31, %v325_v60  ;;  %v384_v0 = vpack.c.b16 %v380_v62, %v379_v61  ;;  %v1501_v60 = vld [vmem:[%s1821_s1 + $0x218] sm:$0xff]  ;;  %986 = vmatpush.bf16.msrb.mxu3 %v1493_v59 }
  0xdb   :  { %v357_v1 = vmax.f32 %v348_v63, 0.0  ;;  %630 = vmatmul.bf16.vlgmr.msra.gmra.mxu3 %v384_v0  ;;  %v393_v12 = vshll.u32 %v384_v0, 16  ;;  %v416_v18 = vrot.slane %v384_v0, 1  ;;  %v391_v4 = vshrl.u32 %v384_v0, 16 }
  0xdc   :  { %v366_v6 = vld [vmem:[#allocation2 + $0x10] sm:$0xff]  ;;  %1008 = vmatpush.bf16.msra.mxu0 %v1502_v56 }
  0xdd   :  { %362 = vst [vmem:[#allocation2 + $0x19] sm:$0xff] %v357_v1  ;;  %v371_v9 = vpack.c.bf16 %v366_v6, %v366_v6  ;;  %v395_v17 = vrot.slane %v393_v12, 1  ;;  %v1500_v1 = vld [vmem:[%s1821_s1 + $0x210] sm:$0xff] }
  0xde   :  { %v327_v3 = vpop.f32.mrf.mxu1 }
  0xdf   :  { %v328_v5 = vadd.f32 %v327_v3, %v305_v2  ;;  %v381_v14 = vunpack.c.l.b16 %v371_v9  ;;  %v396_v23 = vor.u32 %v395_v17, %v391_v4  ;;  %v1492_v3 = vld [vmem:[%s1821_s1 + $0x1d0] sm:$0xff] }
  0xe0   :  { %1009 = vmatpush.bf16.msra.mxu0 %v1501_v60  ;;  %987 = vmatpush.bf16.msrb.mxu3 %v1492_v3 }
  0xe1   :  { %v351_v7 = vadd.f32 %v350_v42, %v328_v5  ;;  %v1486_v42 = vld [vmem:[%s1821_s1 + $0x1a0] sm:$0xff] }
  0xe2   :  { %962 = vmatpush.bf16.msrb.mxu2 %v1486_v42 }
  0xe3   :  { %v358_v8 = vmax.f32 %v351_v7, 0.0  ;;  %v1491_v7 = vld [vmem:[%s1821_s1 + $0x1c8] sm:$0xff] }
  0xe4   :  { %v367_v10 = vld [vmem:[#allocation2 + $0x18] sm:$0xff]  ;;  %1010 = vmatpush.bf16.msra.mxu0 %v1500_v1  ;;  %988 = vmatpush.bf16.msrb.mxu3 %v1491_v7 }
  0xe5   :  { %363 = vst [vmem:[#allocation2 + $0x21] sm:$0x3] %v358_v8  ;;  %v372_v11 = vpack.c.bf16 %v367_v10, %v367_v10  ;;  %v1499_v8 = vld [vmem:[%s1821_s1 + $0x208] sm:$0xff] }
  0xe6   :  { %v329_v13 = vpop.f32.mrf.mxu1  ;;  %963 = vmatpush.bf16.msrb.mxu2 %v1485_v43 }
  0xe7   :  { %v382_v15 = vunpack.c.l.b16 %v372_v11  ;;  %v1490_v13 = vld [vmem:[%s1821_s1 + $0x1c0] sm:$0xff] }
  0xe8   :  { %1011 = vmatpush.bf16.msra.mxu0 %v1499_v8  ;;  %989 = vmatpush.bf16.msrb.mxu3 %v1490_v13  ;;  %v1525_v13 = vld [vmem:[%s1823_s2 + $0x2] ss:$0 sm:$0xff] }
  0xe9   :  { %v385_v16 = vpack.c.b16 %v382_v15, %v381_v14  ;;  %v1498_v14 = vld [vmem:[%s1821_s1 + $0x200] sm:$0xff] }
  0xea   :  { %964 = vmatpush.bf16.msrb.mxu2 %v1484_v46 }
  0xeb   :  { %635 = vmatmul.bf16.gmra.mxu3 %v385_v16  ;;  %v417_v19 = vrot.slane %v385_v16, 1  ;;  %v398_v20 = vshll.u32 %v385_v16, 16  ;;  %v402_v31 = vshrl.u32 %v385_v16, 16 }
  0xec   :  { %v368_v21 = vld [vmem:[#allocation2 + $0x20] sm:$0xf]  ;;  %1012 = vmatpush.bf16.msra.mxu0 %v1498_v14 }
  0xed   :  { %v418_v22 = vsel %vm80_vm0, %v416_v18, %v417_v19  ;;  %v400_v24 = vrot.slane %v398_v20, 1  ;;  %v373_v25 = vpack.c.bf16 %v368_v21, %v368_v21 }
  0xee   :  { %676 = vmatmul.bf16.vlgmr.msra.gmra.mxu1 %v418_v22  ;;  %965 = vmatpush.bf16.msrb.mxu2 %v1483_v50 }
  0xef   :  { %v401_v26 = vsel %vm53_vm1, %v396_v23, %v400_v24  ;;  %v383_v27 = vunpack.c.l.b16 %v373_v25  ;;  %v404_v34 = vor.u32 %v402_v31, %v400_v24 }
  0xf0   :  { %653 = vmatmul.bf16.vlgmr.msrb.gmra.mxu0 %v401_v26 }
  0xf1   :  { %v386_v28 = vpack.c.b16 %v383_v27, %v383_v27 }
  0xf2   :  { %966 = vmatpush.bf16.msrb.mxu2 %v1482_v53 }
  0xf3   :  { %v406_v29 = vshll.u32 %v386_v28, 16  ;;  %v419_v30 = vrot.slane %v386_v28, 1  ;;  %v410_v36 = vshrl.u32 %v386_v28, 16 }
  0xf5   :  { %v408_v32 = vrot.slane %v406_v29, 1  ;;  %v420_v33 = vsel %vm80_vm0, %v417_v19, %v419_v30 }
  0xf6   :  { %1514 = vmatpush.bf16.msra.mxu2 %v1505_v45 }
  0xf7   :  { %v409_v35 = vsel %vm53_vm1, %v404_v34, %v408_v32  ;;  %v412_v37 = vor.u32 %v410_v36, %v408_v32 }
  0xfa   :  { %1515 = vmatpush.bf16.msra.mxu2 %v1504_v49 }
  0xfb   :  { %640 = vmatmul.bf16.gmra.mxu3 %v386_v28 }
  0xfe   :  { %681 = vmatmul.bf16.gmra.mxu1 %v420_v33  ;;  %1516 = vmatpush.bf16.msra.mxu2 %v1503_v52 }
 0x100   :  { %658 = vmatmul.bf16.gmra.mxu0 %v409_v35 }
 0x102   :  { %1517 = vmatpush.bf16.msra.mxu2 %v1502_v56 }
 0x106   :  { %1518 = vmatpush.bf16.msra.mxu2 %v1501_v60 }
 0x10a   :  { %1519 = vmatpush.bf16.msra.mxu2 %v1500_v1 }
 0x10e   :  { %686 = vmatmul.bf16.gmra.mxu1 %v419_v30  ;;  %1520 = vmatpush.bf16.msra.mxu2 %v1499_v8 }
 0x110   :  { %663 = vmatmul.bf16.gmra.mxu0 %v412_v37 }
 0x112   :  { %1521 = vmatpush.bf16.msra.mxu2 %v1498_v14 }
 0x15e   :  { %v631_v47 = vpop.f32.mrf.mxu3 }
 0x15f   :  { %v632_v58 = vadd.f32 %v1765_v55, %v631_v47 }
 0x166   :  { %v633_v54 = vpop.f32.mrf.mxu3 }
 0x167   :  { %v634_v6 = vadd.f32 %v1765_v55, %v633_v54 }
 0x16b   :  { %v677_v57 = vpop.f32.mrf.mxu1 }
 0x16d   :  { %v654_v61 = vpop.f32.mrf.mxu0 }
 0x16e   :  { %v655_v62 = vadd.f32 %v654_v61, %v632_v58  ;;  %v636_v63 = vpop.f32.mrf.mxu3 }
 0x16f   :  { %v637_v17 = vadd.f32 %v1765_v55, %v636_v63 }
 0x170   :  { %v678_v0 = vadd.f32 %v677_v57, %v655_v62 }
 0x172   :  { %v691_v2 = vmax.f32 %v678_v0, 0.0 }
 0x173   :  { %v679_v5 = vpop.f32.mrf.mxu1 }
 0x174   :  { %696 = vst [vmem:[#allocation2 + $0x1] sm:$0xff] %v691_v2 }
 0x175   :  { %v656_v9 = vpop.f32.mrf.mxu0 }
 0x176   :  { %v657_v10 = vadd.f32 %v656_v9, %v634_v6  ;;  %v638_v11 = vpop.f32.mrf.mxu3 }
 0x177   :  { %v639_v26 = vadd.f32 %v1765_v55, %v638_v11 }
 0x178   :  { %v680_v12 = vadd.f32 %v679_v5, %v657_v10 }
 0x17a   :  { %v692_v15 = vmax.f32 %v680_v12, 0.0 }
 0x17b   :  { %v682_v16 = vpop.f32.mrf.mxu1  ;;  %v701_v20 = vld [vmem:[#allocation2] sm:$0xff] }
 0x17c   :  { %697 = vst [vmem:[#allocation2 + $0x9] sm:$0xff] %v692_v15  ;;  %v706_v23 = vpack.c.bf16 %v701_v20, %v701_v20 }
 0x17d   :  { %v659_v18 = vpop.f32.mrf.mxu0 }
 0x17e   :  { %v660_v19 = vadd.f32 %v659_v18, %v637_v17  ;;  %v641_v4 = vpop.f32.mrf.mxu3  ;;  %v716_v31 = vunpack.c.l.b16 %v706_v23 }
 0x17f   :  { %v642_v37 = vadd.f32 %v1765_v55, %v641_v4 }
 0x180   :  { %v683_v21 = vadd.f32 %v682_v16, %v660_v19 }
 0x182   :  { %v693_v22 = vmax.f32 %v683_v21, 0.0 }
 0x183   :  { %v684_v24 = vpop.f32.mrf.mxu1  ;;  %v702_v25 = vld [vmem:[#allocation2 + $0x8] sm:$0xff] }
 0x184   :  { %698 = vst [vmem:[#allocation2 + $0x11] sm:$0xfc] %v693_v22  ;;  %v707_v27 = vpack.c.bf16 %v702_v25, %v702_v25 }
 0x185   :  { %v661_v28 = vpop.f32.mrf.mxu0 }
 0x186   :  { %v662_v29 = vadd.f32 %v661_v28, %v639_v26  ;;  %v643_v30 = vpop.f32.mrf.mxu3  ;;  %v717_v32 = vunpack.c.l.b16 %v707_v27 }
 0x188   :  { %v685_v33 = vadd.f32 %v684_v24, %v662_v29  ;;  %v721_v34 = vpack.c.b16 %v717_v32, %v716_v31 }
 0x18a   :  { %v694_v35 = vmax.f32 %v685_v33, 0.0  ;;  %967 = vmatmul.bf16.vlgmr.msrb.gmra.mxu2 %v721_v34  ;;  %v730_v47 = vshll.u32 %v721_v34, 16  ;;  %v753_v53 = vrot.slane %v721_v34, 1  ;;  %v728_v55 = vshrl.u32 %v721_v34, 16 }
 0x18b   :  { %v687_v36 = vpop.f32.mrf.mxu1  ;;  %v703_v40 = vld [vmem:[#allocation2 + $0x10] sm:$0xff] }
 0x18c   :  { %699 = vst [vmem:[#allocation2 + $0x19] sm:$0xff] %v694_v35  ;;  %v708_v43 = vpack.c.bf16 %v703_v40, %v703_v40  ;;  %v732_v52 = vrot.slane %v730_v47, 1 }
 0x18d   :  { %v664_v38 = vpop.f32.mrf.mxu0 }
 0x18e   :  { %v665_v39 = vadd.f32 %v664_v38, %v642_v37  ;;  %v718_v49 = vunpack.c.l.b16 %v708_v43  ;;  %v733_v59 = vor.u32 %v732_v52, %v728_v55 }
 0x190   :  { %v688_v41 = vadd.f32 %v687_v36, %v665_v39 }
 0x192   :  { %v695_v42 = vmax.f32 %v688_v41, 0.0 }
 0x193   :  { %v689_v44 = vpop.f32.mrf.mxu1  ;;  %v704_v45 = vld [vmem:[#allocation2 + $0x18] sm:$0xff] }
 0x194   :  { %700 = vst [vmem:[#allocation2 + $0x21] sm:$0x3] %v695_v42  ;;  %v709_v46 = vpack.c.bf16 %v704_v45, %v704_v45 }
 0x195   :  { %v666_v48 = vpop.f32.mrf.mxu0 }
 0x196   :  { %v719_v50 = vunpack.c.l.b16 %v709_v46 }
 0x198   :  { %v722_v51 = vpack.c.b16 %v719_v50, %v718_v49 }
 0x19a   :  { %972 = vmatmul.bf16.gmra.mxu2 %v722_v51  ;;  %v754_v54 = vrot.slane %v722_v51, 1  ;;  %v735_v56 = vshll.u32 %v722_v51, 16  ;;  %v739_v3 = vshrl.u32 %v722_v51, 16 }
 0x19b   :  { %v705_v57 = vld [vmem:[#allocation2 + $0x20] sm:$0xf] }
 0x19c   :  { %v755_v58 = vsel %vm80_vm0, %v753_v53, %v754_v54  ;;  %v737_v60 = vrot.slane %v735_v56, 1  ;;  %v710_v61 = vpack.c.bf16 %v705_v57, %v705_v57 }
 0x19d   :  { %1013 = vmatmul.bf16.vlgmr.msra.gmra.mxu0 %v755_v58 }
 0x19e   :  { %v738_v62 = vsel %vm53_vm1, %v733_v59, %v737_v60  ;;  %v720_v63 = vunpack.c.l.b16 %v710_v61  ;;  %v741_v7 = vor.u32 %v739_v3, %v737_v60 }
 0x19f   :  { %990 = vmatmul.bf16.vlgmr.msrb.gmra.mxu3 %v738_v62 }
 0x1a0   :  { %v723_v0 = vpack.c.b16 %v720_v63, %v720_v63 }
 0x1a2   :  { %v743_v1 = vshll.u32 %v723_v0, 16  ;;  %v756_v2 = vrot.slane %v723_v0, 1  ;;  %v747_v9 = vshrl.u32 %v723_v0, 16 }
 0x1a4   :  { %v745_v5 = vrot.slane %v743_v1, 1  ;;  %v757_v6 = vsel %vm80_vm0, %v754_v54, %v756_v2 }
 0x1a6   :  { %v746_v8 = vsel %vm53_vm1, %v741_v7, %v745_v5  ;;  %v749_v10 = vor.u32 %v747_v9, %v745_v5 }
 0x1aa   :  { %977 = vmatmul.bf16.gmra.mxu2 %v723_v0 }
 0x1ad   :  { %1018 = vmatmul.bf16.gmra.mxu0 %v757_v6 }
 0x1af   :  { %995 = vmatmul.bf16.gmra.mxu3 %v746_v8 }
 0x1ba   :  { %1023 = vmatmul.bf16.vlgmr.msra.gmra.mxu2 %v756_v2 }
 0x1bf   :  { %1000 = vmatmul.bf16.gmra.mxu3 %v749_v10 }
 0x20d   :  { %v968_v11 = vpop.f32.mrf.mxu2 }
 0x20e   :  { %v969_v16 = vadd.f32 %v1525_v13, %v968_v11 }
 0x215   :  { %v970_v12 = vpop.f32.mrf.mxu2 }
 0x216   :  { %v971_v22 = vadd.f32 %v1525_v13, %v970_v12 }
 0x21a   :  { %v1014_v15 = vpop.f32.mrf.mxu0 }
 0x21d   :  { %v973_v14 = vpop.f32.mrf.mxu2 }
 0x21e   :  { %v974_v28 = vadd.f32 %v1525_v13, %v973_v14 }
 0x222   :  { %v991_v17 = vpop.f32.mrf.mxu3  ;;  %v1016_v21 = vpop.f32.mrf.mxu0 }
 0x223   :  { %v992_v18 = vadd.f32 %v991_v17, %v969_v16 }
 0x225   :  { %v1015_v19 = vadd.f32 %v1014_v15, %v992_v18  ;;  %v975_v4 = vpop.f32.mrf.mxu2 }
 0x226   :  { %v976_v35 = vadd.f32 %v1525_v13, %v975_v4 }
 0x227   :  { %v1028_v20 = vmax.f32 %v1015_v19, 0.0 }
 0x229   :  { %1033 = vst [vmem:[%s1824_s3] sm:$0xff] %v1028_v20 }
 0x22a   :  { %v993_v23 = vpop.f32.mrf.mxu3  ;;  %v1019_v29 = vpop.f32.mrf.mxu0 }
 0x22b   :  { %v994_v24 = vadd.f32 %v993_v23, %v971_v22 }
 0x22d   :  { %v1017_v25 = vadd.f32 %v1016_v21, %v994_v24  ;;  %v978_v26 = vpop.f32.mrf.mxu2 }
 0x22e   :  { %v979_v42 = vadd.f32 %v1525_v13, %v978_v26 }
 0x22f   :  { %v1029_v27 = vmax.f32 %v1017_v25, 0.0 }
 0x231   :  { %1034 = vst [vmem:[%s1824_s3 + $0x8] sm:$0xff] %v1029_v27 }
 0x232   :  { %v996_v30 = vpop.f32.mrf.mxu3  ;;  %v1021_v38 = vpop.f32.mrf.mxu0 }
 0x233   :  { %v997_v31 = vadd.f32 %v996_v30, %v974_v28 }
 0x235   :  { %v1020_v32 = vadd.f32 %v1019_v29, %v997_v31  ;;  %v980_v33 = vpop.f32.mrf.mxu2 }
 0x237   :  { %v1030_v34 = vmax.f32 %v1020_v32, 0.0 }
 0x239   :  { %1431 = vst [vmem:[%s1824_s3 + $0xe] sm:$0xfc] %v1030_v34 }
 0x23a   :  { %v998_v36 = vpop.f32.mrf.mxu3 }
 0x23b   :  { %v999_v37 = vadd.f32 %v998_v36, %v976_v35 }
 0x23d   :  { %v1022_v39 = vadd.f32 %v1021_v38, %v999_v37  ;;  %v1024_v40 = vpop.f32.mrf.mxu2 }
 0x23f   :  { %v1031_v41 = vmax.f32 %v1022_v39, 0.0 }
 0x241   :  { %1432 = vst [vmem:[%s1824_s3 + $0x16] sm:$0xff] %v1031_v41 }
 0x242   :  { %v1001_v43 = vpop.f32.mrf.mxu3 }
 0x243   :  { %v1002_v44 = vadd.f32 %v1001_v43, %v979_v42 }
 0x245   :  { %v1025_v45 = vadd.f32 %v1024_v40, %v1002_v44  ;;  %v1026_v46 = vpop.f32.mrf.mxu2 }
 0x247   :  { %v1032_v47 = vmax.f32 %v1025_v45, 0.0 }
 0x249   :  { %1433 = vst [vmem:[%s1824_s3 + $0x1e] sm:$0x3] %v1032_v47 }
 0x24a   :  { %v1003_v48 = vpop.f32.mrf.mxu3 }

</bundles_post_ra>
